<compile_context>
chip_gen: v7x
topology: tpu7x:2x2x1
jax: 0.10.0
libtpu: 0.0.40
codegen_flags: <defaults>
</compile_context>

<pallas_src>
import functools

import jax
import jax.numpy as jnp
from jax.experimental import pallas as pl
from jax.experimental.pallas import tpu as pltpu


def _input_process_kernel(x_ref, w_ref, b_ref, o_ref, *, n_inner, lane_n, inner_axis):
    """One row tile of fused rearrange('b n d -> n b d') + Linear.

    Two layouts share this body (loop is unrolled at trace time; n_inner is small & static):
      inner_axis == 0 : x_ref (B,  TN, D), o_ref (TN, B*N)  -- batch packed into lanes (b >= 2)
      inner_axis == 1 : x_ref (TN, R,  D), o_ref (TN, R*N)  -- R consecutive seq rows packed into
                                                               lanes (b == 1, keeps stores lane-dense)
    """
    w = w_ref[...]        # (D, N), VMEM-resident across all grid steps
    bias = b_ref[...]     # (1, N), broadcasts over rows; loaded once per step
    for i in range(n_inner):
        xi = x_ref[i] if inner_axis == 0 else x_ref[:, i, :]              # (TN, D)
        yi = jnp.dot(xi, w, preferred_element_type=jnp.float32) + bias    # f32 MXU accumulate
        # Direct lane-slice store: bounds live values to one yi (no concat / vreg blowup for big B),
        # and the full output block stays lane-dense for the writeback DMA.
        o_ref[:, i * lane_n:(i + 1) * lane_n] = yi.astype(o_ref.dtype)


def input_process_pallas(x, w_t, bias, *, out_dtype=None, step_bytes=4 * 1024 * 1024,
                         tile_rows=None):
    """x: (b, n, d), w_t: (d, N), bias: (N,) -> (n, b, N) == Linear(rearrange(x, 'b n d -> n b d')).

    out_dtype: defaults to x.dtype (module semantics); pass jnp.bfloat16 to cut write traffic ~33%
               on this memory-bound kernel if downstream tolerates it.
    tile_rows: optional override of the row-tile size (testing / sweeps).
    """
    b, n, d = x.shape
    dk, N = w_t.shape
    assert dk == d
    in_dtype = jnp.dtype(x.dtype)
    out_dtype = jnp.dtype(x.dtype if out_dtype is None else out_dtype)

    # ---- lane layout: keep the output block >= 128 lanes whenever possible --------------------
    pack = 1
    if b == 1 and N < 128 and 128 % N == 0:
        r = 128 // N
        if n % r == 0 and n >= r:
            pack = r  # pack r consecutive seq rows per output row -> 128-lane unmasked stores

    if pack > 1:
        rows_total = n // pack
        n_inner, inner_axis = pack, 1
        x_k = x.reshape(rows_total, pack, d)              # free row-major metadata reshape
        in_block = (lambda tn: (tn, pack, d))
        in_map = lambda i: (i, 0, 0)
    else:
        rows_total = n
        n_inner, inner_axis = b, 0
        x_k = x
        in_block = (lambda tn: (b, tn, d))
        in_map = lambda i: (0, i, 0)
    lane_width = n_inner * N

    # ---- tile sizing: amortize ~0.35us/step overhead, stay inside v7x's VMEM ------------------
    # HBM bytes streamed per (outer) row of the grid:
    row_hbm = n_inner * (d * in_dtype.itemsize + N * out_dtype.itemsize)
    # VMEM bytes per (outer) row: minor dims lane-padded to 128, input & output double-buffered.
    d_pad = ((d + 127) // 128) * 128
    lanes_pad = ((lane_width + 127) // 128) * 128
    row_vmem = 2 * (n_inner * d_pad * in_dtype.itemsize + lanes_pad * out_dtype.itemsize)
    vmem_cap = 24 * 1024 * 1024          # conservative: fits v7x's 32 MiB scoped default w/ headroom

    if tile_rows is not None:
        tn = min(int(tile_rows), rows_total)
        if tn < rows_total:
            tn = max(8, (tn // 8) * 8)
    else:
        tn = max(8, step_bytes // max(row_hbm, 1))        # ~4 MiB of HBM traffic per grid step
        tn = min(tn, vmem_cap // max(row_vmem, 1))        # VMEM clamp (v7x-safe)
        tn = min(tn, rows_total)
        if tn < rows_total:
            tn = max(8, (tn // 8) * 8)
        # v7x megacore: give both TensorCores several steps when there is enough work.
        steps = pl.cdiv(rows_total, tn)
        if 1 < steps < 4 and rows_total >= 4 * 8:
            tn = max(8, ((pl.cdiv(rows_total, 4) + 7) // 8) * 8)
            steps = pl.cdiv(rows_total, tn)
        if steps > 1 and steps % 2 == 1:                  # best-effort even step count
            tn_even = max(8, ((pl.cdiv(rows_total, steps + 1) + 7) // 8) * 8)
            if pl.cdiv(rows_total, tn_even) % 2 == 0:
                tn = tn_even
    grid = (pl.cdiv(rows_total, tn),)    # non-divisible tail: Pallas pads reads / masks writes

    # Explicit VMEM budget derived from the actual buffers (+ weights, bias, margin).
    vmem_need = row_vmem * tn + d_pad * (((N + 127) // 128) * 128) * 4 + (1 << 16)
    vmem_limit = int(min(max(vmem_need * 3 // 2 + (2 << 20), 16 << 20), 48 << 20))

    bias2d = bias.reshape(1, N)
    cost = pl.CostEstimate(
        flops=2 * b * n * d * N,
        transcendentals=0,
        bytes_accessed=(b * n * d * in_dtype.itemsize + d * N * 4 + N * 4
                        + b * n * N * out_dtype.itemsize),
    )

    kernel = functools.partial(_input_process_kernel, n_inner=n_inner, lane_n=N,
                               inner_axis=inner_axis)

    out2d = pl.pallas_call(
        kernel,
        out_shape=jax.ShapeDtypeStruct((rows_total, lane_width), out_dtype),
        grid=grid,
        in_specs=[
            pl.BlockSpec(in_block(tn), in_map),            # streamed input tile, auto double-buffered
            pl.BlockSpec((d, N), lambda i: (0, 0)),        # weight: VMEM-resident across steps
            pl.BlockSpec((1, N), lambda i: (0, 0)),        # bias:   VMEM-resident across steps
        ],
        out_specs=pl.BlockSpec((tn, lane_width), lambda i: (i, 0)),  # lane-dense output slab
        compiler_params=pltpu.CompilerParams(
            dimension_semantics=("parallel",),             # shard row tiles across v7x's 2 TCs
            vmem_limit_bytes=vmem_limit,
        ),
        cost_estimate=cost,
    )(x_k, w_t, bias2d)

    # Row-major reshape back to (n, b, N) -- free metadata op for both layouts.
    return out2d.reshape(n, b, N)


class InputProcessPallas:
    """JAX/Pallas port of InputProcess: x (b, n, d) -> (n, b, latent_dim)."""

    def __init__(self, input_feats, latent_dim, key):
        self.input_feats = input_feats
        self.latent_dim = latent_dim
        kw, kb = jax.random.split(key)
        # nn.Linear default init: U(-1/sqrt(fan_in), 1/sqrt(fan_in)); deterministic via key.
        bound = 1.0 / (input_feats ** 0.5)
        # PyTorch weight is (latent_dim, input_feats); store its transpose for x @ W^T.
        self.w_t = jax.random.uniform(kw, (input_feats, latent_dim), jnp.float32, -bound, bound)
        self.bias = jax.random.uniform(kb, (latent_dim,), jnp.float32, -bound, bound)

    def __call__(self, x, **kwargs):
        b, n, d = x.shape
        assert d == self.input_feats
        return input_process_pallas(x, self.w_t, self.bias, **kwargs)


if __name__ == "__main__":
    key = jax.random.PRNGKey(0)
    k_x1, k_x2, k_x3, k_p = jax.random.split(key, 4)

    batch, seq, input_feats, latent_dim = 2, 8, 32, 64
    module = InputProcessPallas(input_feats, latent_dim, k_p)

    def reference(x):
        return jnp.transpose(x, (1, 0, 2)) @ module.w_t + module.bias

    # --- Primary check: small shapes implied by the module ---
    x1 = jax.random.normal(k_x1, (batch, seq, input_feats), dtype=jnp.float32)
    out1 = jax.block_until_ready(module(x1))
    assert out1.shape == (seq, batch, latent_dim)
    assert jnp.allclose(out1, reference(x1), atol=1e-5, rtol=1e-5)

    # --- Secondary check: multi-step grid with a partial tail tile (exercises the pipeline path) ---
    b2, n2 = 3, 20
    x2 = jax.random.normal(k_x2, (b2, n2, input_feats), dtype=jnp.float32)
    out2 = jax.block_until_ready(module(x2, tile_rows=8))   # grid=(3,) with a 4-row tail
    assert out2.shape == (n2, b2, latent_dim)
    assert jnp.allclose(out2, reference(x2), atol=1e-5, rtol=1e-5)

    # --- Tertiary check: b == 1 exercises the lane-dense row-packing path (128-wide output rows) ---
    b3, n3 = 1, 16
    x3 = jax.random.normal(k_x3, (b3, n3, input_feats), dtype=jnp.float32)
    out3 = jax.block_until_ready(module(x3))
    assert out3.shape == (n3, b3, latent_dim)
    assert jnp.allclose(out3, reference(x3), atol=1e-5, rtol=1e-5)

    print("KERNEL_OK")
</pallas_src>

<mosaic_0001>
module attributes {stable_mosaic.version = 11 : i64} {
  func.func @_input_process_kernel(%arg0: i32, %arg1: memref<2x8x32xf32, #tpu.memory_space<vmem>>, %arg2: memref<32x64xf32, #tpu.memory_space<vmem>>, %arg3: memref<1x64xf32, #tpu.memory_space<vmem>>, %arg4: memref<8x128xf32, #tpu.memory_space<vmem>>) attributes {dimension_semantics = [#tpu.dimension_semantics<parallel>], iteration_bounds = array<i64: 1>, scalar_prefetch = 0 : i64, scratch_operands = 0 : i64, tpu.core_type = #tpu.core_type<tc>, window_params = [{transform_indices = @transform_0, window_bounds = array<i64: 2, 8, 32>}, {pipeline_mode = #tpu.pipeline_mode<synchronous>, transform_indices = @transform_1, window_bounds = array<i64: 32, 64>}, {pipeline_mode = #tpu.pipeline_mode<synchronous>, transform_indices = @transform_2, window_bounds = array<i64: 1, 64>}, {transform_indices = @transform_3, window_bounds = array<i64: 8, 128>}]} {
    %c0 = arith.constant 0 : index
    %c0_0 = arith.constant 0 : index
    %0 = vector.load %arg2[%c0, %c0_0] : memref<32x64xf32, #tpu.memory_space<vmem>>, vector<32x64xf32>
    %c0_1 = arith.constant 0 : index
    %c0_2 = arith.constant 0 : index
    %1 = vector.load %arg3[%c0_1, %c0_2] : memref<1x64xf32, #tpu.memory_space<vmem>>, vector<1x64xf32>
    %c0_3 = arith.constant 0 : index
    %c0_4 = arith.constant 0 : index
    %c0_5 = arith.constant 0 : index
    %2 = vector.load %arg1[%c0_3, %c0_4, %c0_5] : memref<2x8x32xf32, #tpu.memory_space<vmem>>, vector<1x8x32xf32>
    %3 = vector.shape_cast %2 : vector<1x8x32xf32> to vector<8x32xf32>
    %cst = arith.constant dense<0.000000e+00> : vector<8x64xf32>
    %4 = tpu.matmul %3, %0, %cst {dimension_numbers = #tpu.dot_dimension_numbers<[1], [0], [0], [1], [0, 0, 1, 1], [], []>} : vector<8x32xf32>, vector<32x64xf32>, vector<8x64xf32> -> vector<8x64xf32>
    %5 = vector.broadcast %1 : vector<1x64xf32> to vector<8x64xf32>
    %6 = arith.addf %4, %5 : vector<8x64xf32>
    %c0_6 = arith.constant 0 : index
    %c0_7 = arith.constant 0 : index
    %7 = vector.load %arg4[%c0_6, %c0_7] : memref<8x128xf32, #tpu.memory_space<vmem>>, vector<8x64xf32>
    tpu.vector_store %arg4[%c0_6, %c0_7], %6 {strides = array<i32>} : memref<8x128xf32, #tpu.memory_space<vmem>>, vector<8x64xf32>,
    %c1 = arith.constant 1 : index
    %c0_8 = arith.constant 0 : index
    %c0_9 = arith.constant 0 : index
    %8 = vector.load %arg1[%c1, %c0_8, %c0_9] : memref<2x8x32xf32, #tpu.memory_space<vmem>>, vector<1x8x32xf32>
    %9 = vector.shape_cast %8 : vector<1x8x32xf32> to vector<8x32xf32>
    %cst_10 = arith.constant dense<0.000000e+00> : vector<8x64xf32>
    %10 = tpu.matmul %9, %0, %cst_10 {dimension_numbers = #tpu.dot_dimension_numbers<[1], [0], [0], [1], [0, 0, 1, 1], [], []>} : vector<8x32xf32>, vector<32x64xf32>, vector<8x64xf32> -> vector<8x64xf32>
    %11 = vector.broadcast %1 : vector<1x64xf32> to vector<8x64xf32>
    %12 = arith.addf %10, %11 : vector<8x64xf32>
    %c0_11 = arith.constant 0 : index
    %c64 = arith.constant 64 : index
    %13 = vector.load %arg4[%c0_11, %c64] : memref<8x128xf32, #tpu.memory_space<vmem>>, vector<8x64xf32>
    tpu.vector_store %arg4[%c0_11, %c64], %12 {strides = array<i32>} : memref<8x128xf32, #tpu.memory_space<vmem>>, vector<8x64xf32>,
    return
  }
  func.func @transform_0(%arg0: i32) -> (i32, i32, i32) {
    %c0_i32 = arith.constant 0 : i32
    %c0_i32_0 = arith.constant 0 : i32
    %c0_i32_1 = arith.constant 0 : i32
    return %c0_i32, %arg0, %c0_i32_0 : i32, i32, i32
  }
  func.func @transform_1(%arg0: i32) -> (i32, i32) {
    %c0_i32 = arith.constant 0 : i32
    %c0_i32_0 = arith.constant 0 : i32
    %c0_i32_1 = arith.constant 0 : i32
    return %c0_i32, %c0_i32_0 : i32, i32
  }
  func.func @transform_2(%arg0: i32) -> (i32, i32) {
    %c0_i32 = arith.constant 0 : i32
    %c0_i32_0 = arith.constant 0 : i32
    %c0_i32_1 = arith.constant 0 : i32
    return %c0_i32, %c0_i32_0 : i32, i32
  }
  func.func @transform_3(%arg0: i32) -> (i32, i32) {
    %c0_i32 = arith.constant 0 : i32
    %c0_i32_0 = arith.constant 0 : i32
    return %arg0, %c0_i32 : i32, i32
  }
}

</mosaic_0001>

<bundles_post_ra>
// kernel: tpu_custom_call.1
= control target key start
LH: loop header
LB: loop body
LE: loop exit
PB: predicated region body
PF: predicated region fallthrough
CT: control target
= control target key end

     0   :  { %8 = vsyncpa [#allocation3], 0  ;;  %s424_s0 = inlined_call_operand.hbm [shape: f32[2,8,32], index: 0, kind: input, shape index: {}]   ;;  %s425_s1 = inlined_call_operand.hbm [shape: f32[32,64], index: 1, kind: input, shape index: {}]   ;;  %s426_s2 = inlined_call_operand.vmem [shape: f32[1,64], index: 2, kind: input, shape index: {}]   ;;  %s427_s3 = inlined_call_operand.hbm [shape: f32[8,128], index: 3, kind: output, shape index: {}]  }
   0x1   :  { %9 = vsyncpa [#allocation6], 0 }
   0x2   :  { %10 = vsyncpa [#allocation4], 0  ;;  %s356_s12 = smov [#allocation2]   ;;  %s284_s16 = scalar_lea.hbm %s424_s0, 256 }
   0x3   :  { %s16_s13 = sshll.u32 %s356_s12, 4  ;;  %p285_p0 = scmp.ne.s32.totalorder %s424_s0, %s284_s16  ;;  %s17_s13 = int_to_ptr.vmem [resolvable:$true] %s16_s13 }
   0x4   :  { %p288_p1 = scmp.lt.u32.totalorder %s284_s16, %s424_s0 }
   0x6   :  { %p290_p2 = pnand %p288_p1, %p285_p0 }
   0x8   :  { %293 = shalt.err (!%p290_p2)
}
   0x9   :  { %s294_s21 = scalar_lea.vmem %s17_s13, 256  ;;  %p299_p4 = scmp.lt.s32.totalorder %s17_s13, %s17_s13 }
   0xa   :  { %p295_p3 = scmp.ne.s32.totalorder %s17_s13, %s294_s21  ;;  %p300_p5 = scmp.lt.s32.totalorder %s294_s21, %s294_s21 }
   0xc   :  { %p301_p6 = por %p300_p5, %p299_p4 }
   0xe   :  { %p302_p7 = pnand %p301_p6, %p295_p3 }
  0x10   :  { %305 = shalt.err (!%p302_p7)
}
  0x11   :  { %s357_s22 = smov 128   ;;  %s358_s23 = smov 8  }
  0x12   :  { %22 = dma.hbm_to_vmem [thread:$0]  %s424_s0, 256, %s17_s13, [#allocation3], %s357_s22, %s357_s22, %s358_s23  }
  0x13   :  { %s359_s26 = smov [#allocation5]   ;;  %s306_s30 = scalar_lea.hbm %s425_s1, 512 }
  0x14   :  { %s28_s27 = sshll.u32 %s359_s26, 4  ;;  %p307_p8 = scmp.ne.s32.totalorder %s425_s1, %s306_s30  ;;  %s29_s27 = int_to_ptr.vmem [resolvable:$true] %s28_s27 }
  0x15   :  { %p310_p9 = scmp.lt.u32.totalorder %s306_s30, %s425_s1 }
  0x17   :  { %p312_p10 = pnand %p310_p9, %p307_p8 }
  0x19   :  { %315 = shalt.err (!%p312_p10)
}
  0x1a   :  { %s316_s8 = scalar_lea.vmem %s29_s27, 512  ;;  %p321_p12 = scmp.lt.s32.totalorder %s29_s27, %s29_s27 }
  0x1b   :  { %p317_p11 = scmp.ne.s32.totalorder %s29_s27, %s316_s8  ;;  %p322_p13 = scmp.lt.s32.totalorder %s316_s8, %s316_s8 }
  0x1d   :  { %p323_p0 = por %p322_p13, %p321_p12 }
  0x1f   :  { %p324_p1 = pnand %p323_p0, %p317_p11 }
  0x21   :  { %327 = shalt.err (!%p324_p1)
}
  0x22   :  { %34 = dma.hbm_to_vmem [thread:$0]  %s425_s1, 512, %s29_s27, [#allocation6], %s357_s22, %s357_s22, %s358_s23  }
  0x23   :  { %350 = dma.done.wait [#allocation3], 256  }
  0x24   :  { %351 = vsyncadd [#allocation3], 4294967040 }
  0x25   :  { %352 = dma.done.wait [#allocation6], 512  }
  0x26   :  { %353 = vsyncadd [#allocation6], 4294966784  ;;  %v360_v0 = vmov 0.0|0.0   ;;  %vm361_vm0 = vmmov 0   ;;  %v362_v1 = vmov 0.0   ;;  %v43_v2 = vld [vmem:[#allocation5] sm:$0xff] }
  0x27   :  { %269 = vmatprep.subr.bf16.mxu1 %v360_v0  ;;  %260 = vmatprep.mubr.msk.f32.mxu1 %vm361_vm0, %v362_v1  ;;  %v44_v3 = vld [vmem:[#allocation5 + $0x8] sm:$0xff]  ;;  %v45_v4 = vld [vmem:[#allocation5 + $0x10] sm:$0xff]  ;;  %v46_v6 = vld [vmem:[#allocation5 + $0x18] sm:$0xff]  ;;  %vm55_vm1 = vcmask 261120   ;;  %vm129_vm2 = vcmask 523264   ;;  %s363_s11 = smov 64  }
  0x28   :  { %263 = vmatprep.subr.bf16.mxu0 %v360_v0  ;;  %249 = vmatprep.mubr.msk.f32.mxu0 %vm361_vm0, %v362_v1  ;;  %v264_v5 = vpack.c.bf16 %v44_v3, %v43_v2  ;;  %v267_v7 = vpack.c.bf16 %v46_v6, %v45_v4  ;;  %v132_v8 = vld [vmem:[#allocation2 + $0x8] sm:$0xff]  ;;  %v48_v9 = vld [vmem:[#allocation2] sm:$0xff]  ;;  %s364_s12 = smov [#allocation7]   ;;  %vm210_vm3 = vcmask 1048064  }
  0x29   :  { %v228_v10 = vld [vmem:[%s426_s2] ss:$0 sm:$0xff]  ;;  %s218_s13 = sshll.u32 %s364_s12, 4  ;;  %s219_s13 = int_to_ptr.vmem [resolvable:$true] %s218_s13 }
  0x2a   :  { %271 = vmatpush3.bf16.msra.mxu1 %v264_v5  ;;  %265 = vmatpush3.bf16.msra.mxu0 %v264_v5  ;;  %s328_s14 = scalar_lea.vmem %s219_s13, 128  ;;  %p333_p3 = scmp.lt.s32.totalorder %s219_s13, %s219_s13 }
  0x2b   :  { %272 = vmatprep.subr.bf16.mxu1 %v360_v0  ;;  %266 = vmatprep.subr.bf16.mxu0 %v360_v0  ;;  %p329_p2 = scmp.ne.s32.totalorder %s219_s13, %s328_s14  ;;  %p334_p4 = scmp.lt.s32.totalorder %s328_s14, %s328_s14 }
  0x2d   :  { %p335_p5 = por %p334_p4, %p333_p3 }
  0x2e   :  { %274 = vmatpush3.bf16.msra.mxu1 %v267_v7  ;;  %268 = vmatpush3.bf16.msra.mxu0 %v267_v7 }
  0x2f   :  { %p336_p6 = pnand %p335_p5, %p329_p2 }
  0x31   :  { %261 = vmatmul.mubr.msk.f32.vlgmr.msra.gmra.mrb[0].mxu1 %vm55_vm1, %v132_v8  ;;  %250 = vmatmul.mubr.msk.f32.vlgmr.msra.gmra.mrb[0].mxu0 %vm55_vm1, %v48_v9 }
 0x104   :  { %v202_v11 = vpop.f32.mrb[0].mxu1  ;;  %v125_v12 = vpop.f32.mrb[0].mxu0 }
 0x105   :  { %v203_v13 = vadd.f32 %v228_v10, %v202_v11  ;;  %v262_v14 = vpop.f32.mrb[1].mxu1  ;;  %v126_v15 = vadd.f32 %v228_v10, %v125_v12  ;;  %v251_v16 = vpop.f32.mrb[1].mxu0 }
 0x107   :  { %207 = vrot.lane.b32.xlu0 %v203_v13, %s363_s11  ;;  %130 = vst.msk [vmem:[#allocation7] sm:$0xff] %vm129_vm2, %v126_v15 }
 0x179   :  { %v208_v17 = vpop.permute.xlu0 %207 }
 0x17a   :  { %211 = vst.msk [vmem:[#allocation7] sm:$0xff] %vm210_vm3, %v208_v17 }
 0x17b   :  { %339 = shalt.err (!%p336_p6)
}
 0x17c   :  { %s340_s16 = scalar_lea.hbm %s427_s3, 128 }
 0x17d   :  { %p341_p7 = scmp.ne.s32.totalorder %s427_s3, %s340_s16  ;;  %p344_p8 = scmp.lt.u32.totalorder %s340_s16, %s427_s3 }
 0x17f   :  { %p346_p9 = pnand %p344_p8, %p341_p7 }
 0x181   :  { %349 = shalt.err (!%p346_p9)
}
 0x182   :  { %221 = dma.vmem_to_hbm [thread:$0]  %s219_s13, 128, %s427_s3, [#allocation4]  }
 0x183   :  { %354 = dma.done.wait [#allocation4], 128  }
 0x184   :  { %355 = vsyncadd [#allocation4], 4294967168 }
 0x185   :  { %225 = vsyncpa [#allocation3], 1 }
 0x186   :  { %226 = vsyncpa [#allocation6], 1 }
 0x187   :  { %227 = vsyncpa [#allocation4], 1 }

</bundles_post_ra>
